<compile_context>
chip_gen: v5e
topology: v5e:2x2
jax: 0.10.0
libtpu: 0.0.40
codegen_flags: <defaults>
</compile_context>

<pallas_src>
import functools

import jax
import jax.numpy as jnp
from jax.experimental import pallas as pl
from jax.experimental.pallas import tpu as pltpu


# ----------------------------------------------------------------------------
# Fused  (im2col-GEMM  ->  optional BatchNorm  ->  optional LeakyReLU)  kernel
# ----------------------------------------------------------------------------
def _fused_gemm_kernel(cols_ref, w_ref, gamma_ref, beta_ref, out_ref, *,
                       use_bn, use_act, eps, slope):
    """out = maybe_lrelu(maybe_bn(cols @ w)) — everything resident in VMEM."""
    x = cols_ref[...]                                     # (M, K)   M = N*OH*OW
    w = w_ref[...]                                        # (K, Cout)
    y = jnp.dot(x, w, preferred_element_type=jnp.float32)  # MXU, f32 accumulate

    if use_bn:
        # Training-mode BatchNorm2d: per-channel stats over (N, OH, OW) == axis 0.
        m = y.shape[0]
        inv_m = 1.0 / float(m)
        mean = jnp.sum(y, axis=0, keepdims=True) * inv_m
        centered = y - mean
        var = jnp.sum(centered * centered, axis=0, keepdims=True) * inv_m
        y = centered * jax.lax.rsqrt(var + eps)
        y = y * gamma_ref[...] + beta_ref[...]

    if use_act:
        y = jnp.where(y >= 0.0, y, slope * y)             # LeakyReLU(0.2) on VPU

    out_ref[...] = y.astype(out_ref.dtype)


def fused_conv_gemm(cols, w_mat, gamma, beta, *, use_bn, use_act,
                    eps=1e-5, slope=0.2):
    M, K = cols.shape
    K2, cout = w_mat.shape
    assert K == K2
    kernel = functools.partial(_fused_gemm_kernel, use_bn=use_bn,
                               use_act=use_act, eps=eps, slope=slope)
    return pl.pallas_call(
        kernel,
        out_shape=jax.ShapeDtypeStruct((M, cout), jnp.float32),
        grid=(1,),
        in_specs=[
            pl.BlockSpec((M, K), lambda i: (0, 0)),       # full-array blocks:
            pl.BlockSpec((K, cout), lambda i: (0, 0)),    # largest tile, 1 step
            pl.BlockSpec((1, cout), lambda i: (0, 0)),
            pl.BlockSpec((1, cout), lambda i: (0, 0)),
        ],
        out_specs=pl.BlockSpec((M, cout), lambda i: (0, 0)),
        compiler_params=pltpu.CompilerParams(
            dimension_semantics=("arbitrary",)),
    )(cols, w_mat, gamma, beta)


# ----------------------------------------------------------------------------
# Wrapper-side layout plumbing (no FLOPs): im2col + torch-weight repacking
# ----------------------------------------------------------------------------
def _im2col(x_nhwc, w_oihw, stride, pad):
    n, h, w, cin = x_nhwc.shape
    cout, cin_w, kh, kw = w_oihw.shape
    assert cin == cin_w
    oh = (h + 2 * pad - kh) // stride + 1
    ow = (w + 2 * pad - kw) // stride + 1
    xp = x_nhwc
    if pad:
        xp = jnp.pad(x_nhwc, ((0, 0), (pad, pad), (pad, pad), (0, 0)))
    patches = []
    for ky in range(kh):
        for kx in range(kw):
            patches.append(
                xp[:, ky:ky + stride * (oh - 1) + 1:stride,
                      kx:kx + stride * (ow - 1) + 1:stride, :])
    cols = jnp.concatenate(patches, axis=-1).reshape(n * oh * ow, kh * kw * cin)
    # torch weight (Cout, Cin, KH, KW) -> (KH*KW*Cin, Cout), matching (ky,kx,cin)
    # ordering used above.
    w_mat = jnp.transpose(w_oihw, (2, 3, 1, 0)).reshape(kh * kw * cin, cout)
    return cols, w_mat, (n, oh, ow, cout)


# ----------------------------------------------------------------------------
# Encoder: same layer construction rule as the PyTorch module
# ----------------------------------------------------------------------------
def make_encoder_params(key, isize, nc, k=100, ndf=64, w_scale=0.05):
    assert isize % 16 == 0, "image size has to be a multiple of 16"
    keys = iter(jax.random.split(key, 64))
    layers = []
    layers.append(dict(
        kind="conv_lrelu", stride=2, pad=1,
        w=w_scale * jax.random.normal(next(keys), (ndf, nc, 4, 4), jnp.float32)))
    csize, cndf = isize // 2, ndf
    while csize > 4:
        in_feat, out_feat = cndf, cndf * 2
        layers.append(dict(
            kind="conv_bn_lrelu", stride=2, pad=1,
            w=w_scale * jax.random.normal(next(keys), (out_feat, in_feat, 4, 4),
                                          jnp.float32),
            gamma=1.0 + 0.1 * jax.random.normal(next(keys), (out_feat,),
                                                jnp.float32),
            beta=0.1 * jax.random.normal(next(keys), (out_feat,), jnp.float32)))
        cndf, csize = out_feat, csize // 2
    layers.append(dict(
        kind="conv", stride=1, pad=0,
        w=w_scale * jax.random.normal(next(keys), (k, cndf, 4, 4), jnp.float32)))
    return layers


def encoder_forward_pallas(x_nchw, layers):
    x = jnp.transpose(x_nchw, (0, 2, 3, 1))               # NHWC: channels on lanes
    for layer in layers:
        cols, w_mat, oshape = _im2col(x, layer["w"], layer["stride"],
                                      layer["pad"])
        cout = oshape[-1]
        if layer["kind"] == "conv_bn_lrelu":
            gamma = layer["gamma"].reshape(1, cout).astype(jnp.float32)
            beta = layer["beta"].reshape(1, cout).astype(jnp.float32)
            use_bn, use_act = True, True
        elif layer["kind"] == "conv_lrelu":
            gamma = jnp.ones((1, cout), jnp.float32)
            beta = jnp.zeros((1, cout), jnp.float32)
            use_bn, use_act = False, True
        else:  # final plain conv
            gamma = jnp.ones((1, cout), jnp.float32)
            beta = jnp.zeros((1, cout), jnp.float32)
            use_bn, use_act = False, False
        y = fused_conv_gemm(cols, w_mat, gamma, beta,
                            use_bn=use_bn, use_act=use_act)
        x = y.reshape(oshape)
    return jnp.transpose(x, (0, 3, 1, 2))                  # back to NCHW


# ----------------------------------------------------------------------------
# Plain-JAX reference (for correctness check)
# ----------------------------------------------------------------------------
def encoder_forward_reference(x_nchw, layers, eps=1e-5, slope=0.2):
    y = x_nchw
    for layer in layers:
        s, p = layer["stride"], layer["pad"]
        y = jax.lax.conv_general_dilated(
            y, layer["w"], (s, s), ((p, p), (p, p)),
            dimension_numbers=("NCHW", "OIHW", "NCHW"),
            precision=jax.lax.Precision.HIGHEST)
        if layer["kind"] == "conv_bn_lrelu":
            mean = jnp.mean(y, axis=(0, 2, 3), keepdims=True)
            var = jnp.mean(jnp.square(y - mean), axis=(0, 2, 3), keepdims=True)
            y = (y - mean) * jax.lax.rsqrt(var + eps)
            y = y * layer["gamma"].reshape(1, -1, 1, 1) \
                  + layer["beta"].reshape(1, -1, 1, 1)
        if layer["kind"] in ("conv_lrelu", "conv_bn_lrelu"):
            y = jnp.where(y >= 0, y, slope * y)
    return y


if __name__ == "__main__":
    # Small shapes consistent with the module: isize=16 (multiple of 16),
    # batch=2, nc=4 input channels, ndf=8 base width, k=16 latent channels.
    batch, nc, isize, ndf, k_latent = 2, 4, 16, 8, 16

    key = jax.random.PRNGKey(0)
    kx, kp = jax.random.split(key)
    x = jax.random.normal(kx, (batch, nc, isize, isize), dtype=jnp.float32)
    layers = make_encoder_params(kp, isize, nc, k=k_latent, ndf=ndf)

    out = encoder_forward_pallas(x, layers)
    out = jax.block_until_ready(out)
    assert out.shape == (batch, k_latent, 1, 1), out.shape

    # Correctness check against plain-JAX convolutions. Tolerance allows for
    # MXU bf16-pass vs full-f32 reference accumulation differences.
    ref = encoder_forward_reference(x, layers)
    max_err = float(jnp.max(jnp.abs(out - ref)))
    assert jnp.allclose(out, ref, rtol=2e-2, atol=2e-2), ("mismatch", max_err)

    print("KERNEL_OK")
</pallas_src>

<mosaic_0001>
module attributes {stable_mosaic.version = 11 : i64} {
  func.func @_fused_gemm_kernel(%arg0: i32, %arg1: memref<128x64xf32, #tpu.memory_space<vmem>>, %arg2: memref<64x8xf32, #tpu.memory_space<vmem>>, %arg3: memref<1x8xf32, #tpu.memory_space<vmem>>, %arg4: memref<1x8xf32, #tpu.memory_space<vmem>>, %arg5: memref<128x8xf32, #tpu.memory_space<vmem>>) attributes {dimension_semantics = [#tpu.dimension_semantics<arbitrary>], iteration_bounds = array<i64: 1>, scalar_prefetch = 0 : i64, scratch_operands = 0 : i64, tpu.core_type = #tpu.core_type<tc>, window_params = [{pipeline_mode = #tpu.pipeline_mode<synchronous>, transform_indices = @transform_0, window_bounds = array<i64: 128, 64>}, {pipeline_mode = #tpu.pipeline_mode<synchronous>, transform_indices = @transform_1, window_bounds = array<i64: 64, 8>}, {pipeline_mode = #tpu.pipeline_mode<synchronous>, transform_indices = @transform_2, window_bounds = array<i64: 1, 8>}, {pipeline_mode = #tpu.pipeline_mode<synchronous>, transform_indices = @transform_3, window_bounds = array<i64: 1, 8>}, {pipeline_mode = #tpu.pipeline_mode<synchronous>, transform_indices = @transform_4, window_bounds = array<i64: 128, 8>}]} {
    %c0 = arith.constant 0 : index
    %c0_0 = arith.constant 0 : index
    %0 = vector.load %arg1[%c0, %c0_0] : memref<128x64xf32, #tpu.memory_space<vmem>>, vector<128x64xf32>
    %c0_1 = arith.constant 0 : index
    %c0_2 = arith.constant 0 : index
    %1 = vector.load %arg2[%c0_1, %c0_2] : memref<64x8xf32, #tpu.memory_space<vmem>>, vector<64x8xf32>
    %cst = arith.constant dense<0.000000e+00> : vector<128x8xf32>
    %2 = tpu.matmul %0, %1, %cst {dimension_numbers = #tpu.dot_dimension_numbers<[1], [0], [0], [1], [0, 0, 1, 1], [], []>} : vector<128x64xf32>, vector<64x8xf32>, vector<128x8xf32> -> vector<128x8xf32>
    %cst_3 = arith.constant 0.000000e+00 : f32
    %3 = vector.broadcast %cst_3 : f32 to vector<128x8xf32>
    %4 = arith.cmpf oge, %2, %3 : vector<128x8xf32>
    %cst_4 = arith.constant 2.000000e-01 : f32
    %5 = vector.broadcast %cst_4 : f32 to vector<128x8xf32>
    %6 = arith.mulf %5, %2 : vector<128x8xf32>
    %7 = arith.select %4, %2, %6 : vector<128x8xi1>, vector<128x8xf32>
    %c0_5 = arith.constant 0 : index
    %c0_6 = arith.constant 0 : index
    %8 = vector.load %arg5[%c0_5, %c0_6] : memref<128x8xf32, #tpu.memory_space<vmem>>, vector<128x8xf32>
    tpu.vector_store %arg5[%c0_5, %c0_6], %7 {strides = array<i32>} : memref<128x8xf32, #tpu.memory_space<vmem>>, vector<128x8xf32>,
    return
  }
  func.func @transform_0(%arg0: i32) -> (i32, i32) {
    %c0_i32 = arith.constant 0 : i32
    %c0_i32_0 = arith.constant 0 : i32
    %c0_i32_1 = arith.constant 0 : i32
    return %c0_i32, %c0_i32_0 : i32, i32
  }
  func.func @transform_1(%arg0: i32) -> (i32, i32) {
    %c0_i32 = arith.constant 0 : i32
    %c0_i32_0 = arith.constant 0 : i32
    %c0_i32_1 = arith.constant 0 : i32
    return %c0_i32, %c0_i32_0 : i32, i32
  }
  func.func @transform_2(%arg0: i32) -> (i32, i32) {
    %c0_i32 = arith.constant 0 : i32
    %c0_i32_0 = arith.constant 0 : i32
    %c0_i32_1 = arith.constant 0 : i32
    return %c0_i32, %c0_i32_0 : i32, i32
  }
  func.func @transform_3(%arg0: i32) -> (i32, i32) {
    %c0_i32 = arith.constant 0 : i32
    %c0_i32_0 = arith.constant 0 : i32
    %c0_i32_1 = arith.constant 0 : i32
    return %c0_i32, %c0_i32_0 : i32, i32
  }
  func.func @transform_4(%arg0: i32) -> (i32, i32) {
    %c0_i32 = arith.constant 0 : i32
    %c0_i32_0 = arith.constant 0 : i32
    %c0_i32_1 = arith.constant 0 : i32
    return %c0_i32, %c0_i32_0 : i32, i32
  }
}

</mosaic_0001>

<bundles_post_ra>
// kernel: tpu_custom_call.1
= control target key start
LH: loop header
LB: loop body
LE: loop exit
PB: predicated region body
PF: predicated region fallthrough
CT: control target
= control target key end

     0   :  { %vm41_vm0 = vcmask 523264   ;;  %vm203_vm1 = vcmask 64512   ;;  %s441_s1 = inlined_call_operand.vmem [shape: f32[64,8], index: 1, kind: input, shape index: {}]   ;;  %s442_s2 = inlined_call_operand.vmem [shape: f32[1,8], index: 2, kind: input, shape index: {}]   ;;  %s443_s3 = inlined_call_operand.vmem [shape: f32[1,8], index: 3, kind: input, shape index: {}]   ;;  %s444_s0 = inlined_call_operand.vmem [shape: f32[128,64], index: 0, kind: input, shape index: {}]   ;;  %s445_s4 = inlined_call_operand.vmem [shape: f32[128,8], index: 4, kind: output, shape index: {}]  }
   0x1   :  { %v40_v0 = vld [vmem:[%s441_s1 + $0x38] sm:$0xff]  ;;  %v39_v1 = vld [vmem:[%s441_s1 + $0x30] sm:$0xff]  ;;  %v38_v2 = vld [vmem:[%s441_s1 + $0x28] sm:$0xff] }
   0x2   :  { %241 = vmatpush.msra.mxu2 %v40_v0  ;;  %242 = vmatpush.msra.mxu3 %v40_v0  ;;  %v37_v3 = vld [vmem:[%s441_s1 + $0x20] sm:$0xff]  ;;  %v36_v4 = vld [vmem:[%s441_s1 + $0x18] sm:$0xff]  ;;  %v35_v5 = vld [vmem:[%s441_s1 + $0x10] sm:$0xff] }
   0x3   :  { %98 = vmatpush.msra.mxu0 %v40_v0  ;;  %240 = vmatpush.msra.mxu1 %v40_v0  ;;  %v34_v6 = vld [vmem:[%s441_s1 + $0x8] sm:$0xff]  ;;  %v33_v7 = vld [vmem:[%s441_s1] sm:$0xff]  ;;  %v27_v16 = vld [vmem:[%s444_s0 + $0x50] sm:$0xff] }
   0x4   :  { %244 = vmatpush.msra.mxu2 %v39_v1  ;;  %245 = vmatpush.msra.mxu3 %v39_v1  ;;  %v25_v8 = vld [vmem:[%s444_s0 + $0x40] sm:$0xff]  ;;  %v26_v12 = vld [vmem:[%s444_s0 + $0x48] sm:$0xff]  ;;  %v31_v17 = vld [vmem:[%s444_s0 + $0x70] sm:$0xff] }
   0x5   :  { %99 = vmatpush.msra.mxu0 %v39_v1  ;;  %243 = vmatpush.msra.mxu1 %v39_v1  ;;  %v29_v9 = vld [vmem:[%s444_s0 + $0x60] sm:$0xff]  ;;  %v30_v13 = vld [vmem:[%s444_s0 + $0x68] sm:$0xff]  ;;  %v19_v18 = vld [vmem:[%s444_s0 + $0x10] sm:$0xff] }
   0x6   :  { %247 = vmatpush.msra.mxu2 %v38_v2  ;;  %248 = vmatpush.msra.mxu3 %v38_v2  ;;  %v17_v10 = vld [vmem:[%s444_s0] sm:$0xff]  ;;  %v18_v14 = vld [vmem:[%s444_s0 + $0x8] sm:$0xff]  ;;  %v23_v19 = vld [vmem:[%s444_s0 + $0x30] sm:$0xff] }
   0x7   :  { %100 = vmatpush.msra.mxu0 %v38_v2  ;;  %246 = vmatpush.msra.mxu1 %v38_v2  ;;  %v21_v11 = vld [vmem:[%s444_s0 + $0x20] sm:$0xff]  ;;  %v22_v15 = vld [vmem:[%s444_s0 + $0x28] sm:$0xff]  ;;  %v28_v20 = vld [vmem:[%s444_s0 + $0x58] sm:$0xff] }
   0x8   :  { %250 = vmatpush.msra.mxu2 %v37_v3  ;;  %251 = vmatpush.msra.mxu3 %v37_v3  ;;  %v32_v21 = vld [vmem:[%s444_s0 + $0x78] sm:$0xff] }
   0x9   :  { %101 = vmatpush.msra.mxu0 %v37_v3  ;;  %249 = vmatpush.msra.mxu1 %v37_v3  ;;  %v20_v22 = vld [vmem:[%s444_s0 + $0x18] sm:$0xff] }
   0xa   :  { %253 = vmatpush.msra.mxu2 %v36_v4  ;;  %254 = vmatpush.msra.mxu3 %v36_v4  ;;  %v24_v23 = vld [vmem:[%s444_s0 + $0x38] sm:$0xff] }
   0xb   :  { %102 = vmatpush.msra.mxu0 %v36_v4  ;;  %252 = vmatpush.msra.mxu1 %v36_v4 }
   0xc   :  { %256 = vmatpush.msra.mxu2 %v35_v5  ;;  %257 = vmatpush.msra.mxu3 %v35_v5 }
   0xd   :  { %103 = vmatpush.msra.mxu0 %v35_v5  ;;  %255 = vmatpush.msra.mxu1 %v35_v5 }
   0xe   :  { %259 = vmatpush.msra.mxu2 %v34_v6  ;;  %260 = vmatpush.msra.mxu3 %v34_v6 }
   0xf   :  { %104 = vmatpush.msra.mxu0 %v34_v6  ;;  %258 = vmatpush.msra.mxu1 %v34_v6 }
  0x10   :  { %262 = vmatpush.msra.mxu2 %v33_v7  ;;  %263 = vmatpush.msra.mxu3 %v33_v7 }
  0x11   :  { %232 = vmatmul.msk.f32.vlgmr.msra.gmra.mxu2 %vm41_vm0, %v25_v8  ;;  %236 = vmatmul.msk.f32.vlgmr.msra.gmra.mxu3 %vm41_vm0, %v29_v9 }
  0x12   :  { %105 = vmatpush.msra.mxu0 %v33_v7  ;;  %261 = vmatpush.msra.mxu1 %v33_v7 }
  0x13   :  { %224 = vmatmul.msk.f32.vlgmr.msra.gmra.mxu0 %vm41_vm0, %v17_v10  ;;  %228 = vmatmul.msk.f32.vlgmr.msra.gmra.mxu1 %vm41_vm0, %v21_v11 }
  0x19   :  { %233 = vmatmul.msk.f32.gmra.mxu2 %vm41_vm0, %v26_v12  ;;  %237 = vmatmul.msk.f32.gmra.mxu3 %vm41_vm0, %v30_v13 }
  0x1b   :  { %225 = vmatmul.msk.f32.gmra.mxu0 %vm41_vm0, %v18_v14  ;;  %229 = vmatmul.msk.f32.gmra.mxu1 %vm41_vm0, %v22_v15 }
  0x21   :  { %234 = vmatmul.msk.f32.gmra.mxu2 %vm41_vm0, %v27_v16  ;;  %238 = vmatmul.msk.f32.gmra.mxu3 %vm41_vm0, %v31_v17 }
  0x23   :  { %226 = vmatmul.msk.f32.gmra.mxu0 %vm41_vm0, %v19_v18  ;;  %230 = vmatmul.msk.f32.gmra.mxu1 %vm41_vm0, %v23_v19 }
  0x29   :  { %235 = vmatmul.msk.f32.gmra.mxu2 %vm41_vm0, %v28_v20  ;;  %239 = vmatmul.msk.f32.gmra.mxu3 %vm41_vm0, %v32_v21 }
  0x2b   :  { %227 = vmatmul.msk.f32.gmra.mxu0 %vm41_vm0, %v20_v22  ;;  %231 = vmatmul.msk.f32.gmra.mxu1 %vm41_vm0, %v24_v23 }
  0x90   :  { %v107_v24 = vpop.f32.mrf.mxu0  ;;  %v119_v25 = vpop.f32.mrf.mxu1 }
  0x91   :  { %vm155_vm2 = vcmp.ge.f32.partialorder %v107_v24, 0.0  ;;  %v171_v26 = vmul.f32 0.2, %v107_v24  ;;  %vm159_vm3 = vcmp.ge.f32.partialorder %v119_v25, 0.0  ;;  %v175_v27 = vmul.f32 0.2, %v119_v25 }
  0x93   :  { %v187_v28 = vsel %vm155_vm2, %v107_v24, %v171_v26  ;;  %v191_v29 = vsel %vm159_vm3, %v119_v25, %v175_v27 }
  0x94   :  { %204 = vst.msk [vmem:[%s445_s4] sm:$0xff] %vm203_vm1, %v187_v28  ;;  %v131_v30 = vpop.f32.mrf.mxu2  ;;  %v143_v31 = vpop.f32.mrf.mxu3 }
  0x95   :  { %208 = vst.msk [vmem:[%s445_s4 + $0x20] sm:$0xff] %vm203_vm1, %v191_v29  ;;  %vm163_vm4 = vcmp.ge.f32.partialorder %v131_v30, 0.0  ;;  %v179_v32 = vmul.f32 0.2, %v131_v30  ;;  %vm167_vm5 = vcmp.ge.f32.partialorder %v143_v31, 0.0 }
  0x96   :  { %v183_v33 = vmul.f32 0.2, %v143_v31 }
  0x97   :  { %v195_v34 = vsel %vm163_vm4, %v131_v30, %v179_v32 }
  0x98   :  { %212 = vst.msk [vmem:[%s445_s4 + $0x40] sm:$0xff] %vm203_vm1, %v195_v34  ;;  %v199_v35 = vsel %vm167_vm5, %v143_v31, %v183_v33  ;;  %v110_v36 = vpop.f32.mrf.mxu0  ;;  %v122_v37 = vpop.f32.mrf.mxu1 }
  0x99   :  { %216 = vst.msk [vmem:[%s445_s4 + $0x60] sm:$0xff] %vm203_vm1, %v199_v35  ;;  %vm156_vm6 = vcmp.ge.f32.partialorder %v110_v36, 0.0  ;;  %v172_v38 = vmul.f32 0.2, %v110_v36  ;;  %vm160_vm7 = vcmp.ge.f32.partialorder %v122_v37, 0.0 }
  0x9a   :  { %v176_v39 = vmul.f32 0.2, %v122_v37 }
  0x9b   :  { %v188_v40 = vsel %vm156_vm6, %v110_v36, %v172_v38 }
  0x9c   :  { %205 = vst.msk [vmem:[%s445_s4 + $0x8] sm:$0xff] %vm203_vm1, %v188_v40  ;;  %v192_v41 = vsel %vm160_vm7, %v122_v37, %v176_v39  ;;  %v134_v42 = vpop.f32.mrf.mxu2  ;;  %v146_v43 = vpop.f32.mrf.mxu3 }
  0x9d   :  { %209 = vst.msk [vmem:[%s445_s4 + $0x28] sm:$0xff] %vm203_vm1, %v192_v41  ;;  %vm164_vm8 = vcmp.ge.f32.partialorder %v134_v42, 0.0  ;;  %v180_v44 = vmul.f32 0.2, %v134_v42  ;;  %vm168_vm9 = vcmp.ge.f32.partialorder %v146_v43, 0.0 }
  0x9e   :  { %v184_v45 = vmul.f32 0.2, %v146_v43 }
  0x9f   :  { %v196_v46 = vsel %vm164_vm8, %v134_v42, %v180_v44 }
  0xa0   :  { %213 = vst.msk [vmem:[%s445_s4 + $0x48] sm:$0xff] %vm203_vm1, %v196_v46  ;;  %v200_v47 = vsel %vm168_vm9, %v146_v43, %v184_v45  ;;  %v113_v48 = vpop.f32.mrf.mxu0  ;;  %v125_v49 = vpop.f32.mrf.mxu1 }
  0xa1   :  { %217 = vst.msk [vmem:[%s445_s4 + $0x68] sm:$0xff] %vm203_vm1, %v200_v47  ;;  %vm157_vm10 = vcmp.ge.f32.partialorder %v113_v48, 0.0  ;;  %v173_v50 = vmul.f32 0.2, %v113_v48  ;;  %vm161_vm11 = vcmp.ge.f32.partialorder %v125_v49, 0.0 }
  0xa2   :  { %v177_v51 = vmul.f32 0.2, %v125_v49 }
  0xa3   :  { %v189_v52 = vsel %vm157_vm10, %v113_v48, %v173_v50 }
  0xa4   :  { %206 = vst.msk [vmem:[%s445_s4 + $0x10] sm:$0xff] %vm203_vm1, %v189_v52  ;;  %v193_v53 = vsel %vm161_vm11, %v125_v49, %v177_v51  ;;  %v137_v54 = vpop.f32.mrf.mxu2  ;;  %v149_v55 = vpop.f32.mrf.mxu3 }
  0xa5   :  { %210 = vst.msk [vmem:[%s445_s4 + $0x30] sm:$0xff] %vm203_vm1, %v193_v53  ;;  %vm165_vm12 = vcmp.ge.f32.partialorder %v137_v54, 0.0  ;;  %v181_v56 = vmul.f32 0.2, %v137_v54  ;;  %vm169_vm13 = vcmp.ge.f32.partialorder %v149_v55, 0.0 }
  0xa6   :  { %v185_v57 = vmul.f32 0.2, %v149_v55 }
  0xa7   :  { %v197_v58 = vsel %vm165_vm12, %v137_v54, %v181_v56 }
  0xa8   :  { %214 = vst.msk [vmem:[%s445_s4 + $0x50] sm:$0xff] %vm203_vm1, %v197_v58  ;;  %v201_v59 = vsel %vm169_vm13, %v149_v55, %v185_v57  ;;  %v116_v60 = vpop.f32.mrf.mxu0  ;;  %v128_v61 = vpop.f32.mrf.mxu1 }
  0xa9   :  { %218 = vst.msk [vmem:[%s445_s4 + $0x70] sm:$0xff] %vm203_vm1, %v201_v59  ;;  %vm158_vm14 = vcmp.ge.f32.partialorder %v116_v60, 0.0  ;;  %v174_v62 = vmul.f32 0.2, %v116_v60  ;;  %vm162_vm15 = vcmp.ge.f32.partialorder %v128_v61, 0.0 }
  0xaa   :  { %v178_v63 = vmul.f32 0.2, %v128_v61 }
  0xab   :  { %v190_v0 = vsel %vm158_vm14, %v116_v60, %v174_v62 }
  0xac   :  { %207 = vst.msk [vmem:[%s445_s4 + $0x18] sm:$0xff] %vm203_vm1, %v190_v0  ;;  %v194_v1 = vsel %vm162_vm15, %v128_v61, %v178_v63  ;;  %v140_v2 = vpop.f32.mrf.mxu2  ;;  %v152_v3 = vpop.f32.mrf.mxu3 }
  0xad   :  { %211 = vst.msk [vmem:[%s445_s4 + $0x38] sm:$0xff] %vm203_vm1, %v194_v1  ;;  %vm166_vm0 = vcmp.ge.f32.partialorder %v140_v2, 0.0  ;;  %v182_v4 = vmul.f32 0.2, %v140_v2  ;;  %vm170_vm2 = vcmp.ge.f32.partialorder %v152_v3, 0.0 }
  0xae   :  { %v186_v5 = vmul.f32 0.2, %v152_v3 }
  0xaf   :  { %v198_v6 = vsel %vm166_vm0, %v140_v2, %v182_v4 }
  0xb0   :  { %215 = vst.msk [vmem:[%s445_s4 + $0x58] sm:$0xff] %vm203_vm1, %v198_v6  ;;  %v202_v7 = vsel %vm170_vm2, %v152_v3, %v186_v5 }
  0xb1   :  { %219 = vst.msk [vmem:[%s445_s4 + $0x78] sm:$0xff] %vm203_vm1, %v202_v7 }

</bundles_post_ra>
